<compile_context>
chip_gen: v7x
topology: tpu7x:2x2x1
jax: 0.10.0
libtpu: 0.0.40
codegen_flags: <defaults>
</compile_context>

<pallas_src>
import math

import jax
import jax.numpy as jnp
from jax.experimental import pallas as pl
from jax.experimental.pallas import tpu as pltpu


# --------------------------------------------------------------------------
# Interpolation weights (PyTorch align_corners=False semantics).
# --------------------------------------------------------------------------
def _bilinear_weight_matrix(in_size: int, out_size: int) -> jnp.ndarray:
    """(out_size, in_size) 1-D interpolation matrix, align_corners=False."""
    dst = jnp.arange(out_size, dtype=jnp.float32)
    # src = (dst + 0.5) * in/out - 0.5, clamped below at 0 (PyTorch
    # area_pixel_compute_source_index); index clipping replicates the edge.
    src = (dst + 0.5) * (float(in_size) / float(out_size)) - 0.5
    src = jnp.maximum(src, 0.0)
    i0f = jnp.floor(src)
    frac = src - i0f
    i0 = jnp.clip(i0f.astype(jnp.int32), 0, in_size - 1)
    i1 = jnp.clip(i0 + 1, 0, in_size - 1)
    rows = jnp.arange(out_size)
    w = jnp.zeros((out_size, in_size), jnp.float32)
    w = w.at[rows, i0].add(1.0 - frac)
    w = w.at[rows, i1].add(frac)
    return w


# --------------------------------------------------------------------------
# Small helpers.
# --------------------------------------------------------------------------
def _cdiv(a: int, b: int) -> int:
    return -(-a // b)


def _ceil_to(n: int, m: int) -> int:
    return _cdiv(n, m) * m


def _lane_pad(n: int) -> int:
    return _ceil_to(n, 128)


def _pad_batch(xf: jnp.ndarray, bp: int) -> jnp.ndarray:
    b = xf.shape[0]
    if bp == b:
        return xf
    pad = [(0, bp - b)] + [(0, 0)] * (xf.ndim - 1)
    return jnp.pad(xf, pad)


def _chip_name() -> str:
    try:
        return str(jax.devices()[0].device_kind).lower()
    except Exception:
        return ""


def _num_tensorcores() -> int:
    try:
        info = pltpu.get_tpu_info()
        for attr in ("num_cores", "core_count", "num_tensorcores",
                     "tensorcores_per_chip"):
            v = getattr(info, attr, None)
            if v:
                return int(v)
    except Exception:
        pass
    kind = _chip_name()
    if "v7" in kind or "v5p" in kind or "v4" in kind:
        return 2
    return 1


def _vmem_limit_bytes() -> int:
    cap = 64 * 1024 * 1024  # conservative default (v7x per-core VMEM)
    try:
        cap = int(getattr(pltpu.get_tpu_info(), "vmem_capacity_bytes", cap))
    except Exception:
        pass
    if "v7" in _chip_name():
        cap = min(cap, 64 * 1024 * 1024)   # 64 MiB per TensorCore on v7x
    if cap >= 128 * 1024 * 1024:
        # 128 MiB parts (v5e / v6e): ~100 MiB scoped, ~28 MiB headroom.
        return 100 * 1024 * 1024
    # 64 MiB parts (v7x): ~48 MiB scoped, 16 MiB headroom.
    return max(32 * 1024 * 1024, cap - 16 * 1024 * 1024)


def _kron_flops_per_byte_limit() -> float:
    """Per-generation bf16-MXU/HBM balance point (flops per HBM byte)."""
    kind = _chip_name()
    if "v6" in kind:
        return 650.0
    if "v7" in kind:
        return 600.0
    if "v5p" in kind or "v4" in kind:
        return 300.0
    return 240.0  # v5e / unknown: conservative


def _pick_batch_tile(batch: int, per_slab_bytes: int, resident_bytes: int,
                     vmem_limit: int, num_cores: int,
                     sublane_batch: bool):
    """How many (n, c) slabs per grid step and how many grid steps.

    per_slab_bytes must already include pipelining factors (2x for
    double-buffered in/out blocks, 1x for scratch)."""
    budget = vmem_limit - 2 * resident_bytes - 4 * 1024 * 1024
    budget = max(budget, 2 * 1024 * 1024)
    tb = int(max(1, budget // max(per_slab_bytes, 1)))
    tb = min(tb, batch, 4096)
    g = _cdiv(batch, tb)
    # On multi-TensorCore chips make the (parallel) grid length a multiple of
    # the core count so the megacore split is balanced; never force extra
    # grid steps on 1-TC chips (v5e/v6e).
    if num_cores > 1 and batch >= 2 * 8:
        g = _ceil_to(max(g, num_cores), num_cores)
    tb = _cdiv(batch, g)
    if sublane_batch:
        tb = _ceil_to(tb, 8)           # (8,128) sublane constraint on 2D blocks
    elif tb >= 8 and _ceil_to(tb, 8) * per_slab_bytes <= budget:
        tb = _ceil_to(tb, 8)
    return int(tb), int(g)


# --------------------------------------------------------------------------
# Kernels.
# --------------------------------------------------------------------------
def _kron_upsample_kernel(kt_ref, x_ref, o_ref):
    # x_ref: (TB, H*W) [input dtype], kt_ref: (H*W, Ho*Wo) [bf16],
    # o_ref: (TB, Ho*Wo).  bf16 MXU operands, f32 accumulation, cast on store.
    x = x_ref[...].astype(kt_ref.dtype)
    o_ref[...] = jnp.dot(
        x, kt_ref[...], preferred_element_type=jnp.float32
    ).astype(o_ref.dtype)


def _separable_upsample_kernel(wwt_ref, wh_ref, x_ref, o_ref, t_ref):
    # wwt_ref: (W, Wop), wh_ref: (Ho, H) [f32], x_ref: (TB, H, W),
    # o_ref: (TB, Ho, Wop), t_ref: (TB*H, Wop) f32 scratch.
    tb, H, W = x_ref.shape
    # Stage 1: W-interpolation for ALL slabs as one lane-dense MXU matmul
    # (M = TB*H amortizes MXU push/drain); f32 accumulation into scratch.
    xm = x_ref[...].reshape(tb * H, W)
    t_ref[...] = jnp.dot(xm, wwt_ref[...], preferred_element_type=jnp.float32)

    # Stage 2: H-interpolation per slab.  Intermediate stays f32 so the
    # result is only rounded once, at the final store.
    def body(b, carry):
        start = b * H
        if H % 8 == 0:
            start = pl.multiple_of(start, 8)
        t = t_ref[pl.ds(start, H), :]
        o_ref[b] = jnp.dot(
            wh_ref[...], t, preferred_element_type=jnp.float32
        ).astype(o_ref.dtype)
        return carry

    jax.lax.fori_loop(0, tb, body, 0, unroll=True)


# --------------------------------------------------------------------------
# Wrapper (equivalent of Upsampling2d(scale_factor)(x) for NCHW input).
# --------------------------------------------------------------------------
def upsample2d_bilinear(x: jnp.ndarray, scale_factor) -> jnp.ndarray:
    N, C, H, W = x.shape
    if isinstance(scale_factor, (tuple, list)):
        sh, sw = float(scale_factor[0]), float(scale_factor[1])
    else:
        sh = sw = float(scale_factor)
    Ho = int(math.floor(H * sh))
    Wo = int(math.floor(W * sw))
    B = N * C

    is_bf16 = (x.dtype.name == "bfloat16")
    x_esize = x.dtype.itemsize

    wh = _bilinear_weight_matrix(H, Ho)          # (Ho, H), f32
    ww = _bilinear_weight_matrix(W, Wo)          # (Wo, W), f32

    vmem_limit = _vmem_limit_bytes()
    cores = _num_tensorcores()
    params = pltpu.CompilerParams(
        dimension_semantics=("parallel",),
        vmem_limit_bytes=vmem_limit,
    )

    # --- generation-aware Kron-vs-separable decision ------------------------
    # Kron path: flops = 2*HW*HoWo per slab, HBM bytes = (HW+HoWo)*esize.
    kron_ai = (2.0 * H * W * Ho * Wo) / ((H * W + Ho * Wo) * x_esize)
    kron_bytes = _ceil_to(H * W, 8) * _lane_pad(Ho * Wo) * 2   # bf16 weight
    use_kron = (kron_ai <= 0.7 * _kron_flops_per_byte_limit()
                and kron_bytes <= min(8 * 1024 * 1024, vmem_limit // 6))

    if use_kron:
        # --- small spatial maps: single fused, lane-dense bf16 matmul ------
        kt = jnp.kron(wh, ww).T.astype(jnp.bfloat16)          # (H*W, Ho*Wo)
        xf = x.reshape(B, H * W)                              # contiguous
        per_slab = 2 * (_lane_pad(H * W) + _lane_pad(Ho * Wo)) * x_esize
        tb, g = _pick_batch_tile(B, per_slab, kron_bytes, vmem_limit, cores,
                                 sublane_batch=True)
        xf = _pad_batch(xf, g * tb)
        out = pl.pallas_call(
            _kron_upsample_kernel,
            out_shape=jax.ShapeDtypeStruct((g * tb, Ho * Wo), x.dtype),
            grid=(g,),
            in_specs=[
                pl.BlockSpec((H * W, Ho * Wo), lambda i: (0, 0)),  # resident
                pl.BlockSpec((tb, H * W), lambda i: (i, 0)),
            ],
            out_specs=pl.BlockSpec((tb, Ho * Wo), lambda i: (i, 0)),
            compiler_params=params,
        )(kt, xf)
        if g * tb != B:
            out = out[:B]
        return out.reshape(N, C, Ho, Wo)

    # --- large spatial maps: separable two-stage form -----------------------
    # TODO(synk): slabs whose (H,W)+(Ho,Wop) blocks plus the f32 intermediate
    # exceed the VMEM budget even at TB=1 would additionally need spatial
    # (row) tiling.
    Wop = _lane_pad(Wo)                                   # lane-dense output
    cdt = jnp.bfloat16 if is_bf16 else jnp.float32
    wwt = ww.T                                            # (W, Wo), f32
    if Wop != Wo:
        wwt = jnp.pad(wwt, ((0, 0), (0, Wop - Wo)))
    wwt = wwt.astype(cdt)                                 # stage-1 operand
    whc = wh                                              # stage-2 stays f32
    xf = x.reshape(B, H, W)

    x_slab = _ceil_to(H, 8) * _lane_pad(W) * x_esize
    o_slab = _ceil_to(Ho, 8) * Wop * x_esize
    t_slab = _ceil_to(H, 8) * Wop * 4                     # f32 scratch
    per_slab = 2 * (x_slab + o_slab) + t_slab
    resident = (_ceil_to(Ho, 8) * _lane_pad(H) * 4
                + _ceil_to(W, 8) * Wop * (2 if is_bf16 else 4))
    tb, g = _pick_batch_tile(B, per_slab, resident, vmem_limit, cores,
                             sublane_batch=False)
    xf = _pad_batch(xf, g * tb)
    out = pl.pallas_call(
        _separable_upsample_kernel,
        out_shape=jax.ShapeDtypeStruct((g * tb, Ho, Wop), x.dtype),
        grid=(g,),
        in_specs=[
            pl.BlockSpec((W, Wop), lambda i: (0, 0)),     # Ww^T, resident
            pl.BlockSpec((Ho, H), lambda i: (0, 0)),      # Wh, resident
            pl.BlockSpec((tb, H, W), lambda i: (i, 0, 0)),
        ],
        out_specs=pl.BlockSpec((tb, Ho, Wop), lambda i: (i, 0, 0)),
        scratch_shapes=[pltpu.VMEM((tb * H, Wop), jnp.float32)],
        compiler_params=params,
    )(wwt, whc, xf)
    if g * tb != B or Wop != Wo:
        out = out[:B, :, :Wo]
    return out.reshape(N, C, Ho, Wo)


class Upsampling2d:
    """Drop-in equivalent of neurofire's Upsampling2d (NCHW, bilinear)."""

    def __init__(self, scale_factor):
        self.scale_factor = scale_factor

    def __call__(self, x):
        return upsample2d_bilinear(x, self.scale_factor)


if __name__ == "__main__":
    key = jax.random.PRNGKey(0)
    N, C, H, W = 2, 4, 16, 16
    scale_factor = 2

    x = jax.random.normal(key, (N, C, H, W), dtype=jnp.float32)

    up = jax.jit(lambda t: upsample2d_bilinear(t, scale_factor))
    y = jax.block_until_ready(up(x))

    Ho, Wo = H * scale_factor, W * scale_factor
    assert y.shape == (N, C, Ho, Wo), y.shape
    assert y.dtype == x.dtype, y.dtype

    # Reference: same separable interpolation evaluated with plain XLA (f32).
    wh_ref = _bilinear_weight_matrix(H, Ho)
    ww_ref = _bilinear_weight_matrix(W, Wo)
    ref = jnp.einsum("oh,nchw,pw->ncop", wh_ref, x, ww_ref)
    err = float(jnp.max(jnp.abs(y.astype(jnp.float32) - ref)))
    assert err < 5e-2, f"max abs error {err}"

    print("KERNEL_OK")
</pallas_src>

<mosaic_0001>
module attributes {stable_mosaic.version = 11 : i64} {
  func.func private @main(%arg0: i32) attributes {dimension_semantics = [#tpu.dimension_semantics<core_parallel>], iteration_bounds = array<i64: 2>, tpu.core_type = #tpu.core_type<sc_scalar_subcore>, window_params = []} {
    return
  }
}

module attributes {stable_mosaic.version = 11 : i64} {
  func.func private @main(%arg0: i32) attributes {dimension_semantics = [#tpu.dimension_semantics<core_parallel>], iteration_bounds = array<i64: 2>, tpu.core_type = #tpu.core_type<sc_scalar_subcore>, window_params = []} {
    return
  }
}

module attributes {stable_mosaic.version = 11 : i64} {
  func.func @_kron_upsample_kernel(%arg0: i32, %arg1: memref<256x1024xbf16, #tpu.memory_space<vmem>>, %arg2: memref<8x256xf32, #tpu.memory_space<vmem>>, %arg3: memref<8x1024xf32, #tpu.memory_space<vmem>>) attributes {dimension_semantics = [#tpu.dimension_semantics<parallel>], iteration_bounds = array<i64: 1>, scalar_prefetch = 0 : i64, scratch_operands = 0 : i64, tpu.core_type = #tpu.core_type<tc>, window_params = [{pipeline_mode = #tpu.pipeline_mode<synchronous>, transform_indices = @transform_0, window_bounds = array<i64: 256, 1024>}, {transform_indices = @transform_1, window_bounds = array<i64: 8, 256>}, {transform_indices = @transform_2, window_bounds = array<i64: 8, 1024>}]} {
    %c0 = arith.constant 0 : index
    %c0_0 = arith.constant 0 : index
    %0 = vector.load %arg2[%c0, %c0_0] : memref<8x256xf32, #tpu.memory_space<vmem>>, vector<8x256xf32>
    %1 = arith.truncf %0 : vector<8x256xf32> to vector<8x256xbf16>
    %c0_1 = arith.constant 0 : index
    %c0_2 = arith.constant 0 : index
    %2 = vector.load %arg1[%c0_1, %c0_2] : memref<256x1024xbf16, #tpu.memory_space<vmem>>, vector<256x1024xbf16>
    %cst = arith.constant dense<0.000000e+00> : vector<8x1024xf32>
    %3 = tpu.matmul %1, %2, %cst {dimension_numbers = #tpu.dot_dimension_numbers<[1], [0], [0], [1], [0, 0, 1, 1], [], []>} : vector<8x256xbf16>, vector<256x1024xbf16>, vector<8x1024xf32> -> vector<8x1024xf32>
    %c0_3 = arith.constant 0 : index
    %c0_4 = arith.constant 0 : index
    %4 = vector.load %arg3[%c0_3, %c0_4] : memref<8x1024xf32, #tpu.memory_space<vmem>>, vector<8x1024xf32>
    tpu.vector_store %arg3[%c0_3, %c0_4], %3 {strides = array<i32>} : memref<8x1024xf32, #tpu.memory_space<vmem>>, vector<8x1024xf32>,
    return
  }
  func.func @transform_0(%arg0: i32) -> (i32, i32) {
    %c0_i32 = arith.constant 0 : i32
    %c0_i32_0 = arith.constant 0 : i32
    %c0_i32_1 = arith.constant 0 : i32
    return %c0_i32, %c0_i32_0 : i32, i32
  }
  func.func @transform_1(%arg0: i32) -> (i32, i32) {
    %c0_i32 = arith.constant 0 : i32
    %c0_i32_0 = arith.constant 0 : i32
    return %arg0, %c0_i32 : i32, i32
  }
  func.func @transform_2(%arg0: i32) -> (i32, i32) {
    %c0_i32 = arith.constant 0 : i32
    %c0_i32_0 = arith.constant 0 : i32
    return %arg0, %c0_i32 : i32, i32
  }
}

</mosaic_0001>

<bundles_post_ra>
// kernel: _lambda_.1
= control target key start
LH: loop header
LB: loop body
LE: loop exit
PB: predicated region body
PF: predicated region fallthrough
CT: control target
= control target key end

     0   :  { %s1528_s0 = inlined_call_operand.vmem [shape: bf16[256,1024], index: 0, kind: input, shape index: {}]   ;;  %s1529_s1 = inlined_call_operand.vmem [shape: f32[8,256], index: 1, kind: input, shape index: {}]   ;;  %s1530_s2 = inlined_call_operand.vmem [shape: f32[8,1024], index: 2, kind: output, shape index: {}]  }
   0x1   :  { %v15_v0 = vld [vmem:[%s1528_s0] sm:$0xff]  ;;  %v16_v2 = vld [vmem:[%s1528_s0 + $0x8] sm:$0xff] }
   0x2   :  { %v19_v1 = vld [vmem:[%s1528_s0 + $0x20] sm:$0xff]  ;;  %v20_v4 = vld [vmem:[%s1528_s0 + $0x28] sm:$0xff] }
   0x3   :  { %v960_v3 = vcombine.high %v15_v0, %v19_v1  ;;  %v959_v5 = vcombine.low %v15_v0, %v19_v1  ;;  %v23_v6 = vld [vmem:[%s1528_s0 + $0x40] sm:$0xff]  ;;  %v962_v8 = vcombine.high %v16_v2, %v20_v4  ;;  %v961_v9 = vcombine.low %v16_v2, %v20_v4  ;;  %v24_v11 = vld [vmem:[%s1528_s0 + $0x48] sm:$0xff] }
   0x4   :  { %v27_v7 = vld [vmem:[%s1528_s0 + $0x60] sm:$0xff]  ;;  %v28_v12 = vld [vmem:[%s1528_s0 + $0x68] sm:$0xff] }
   0x5   :  { %v968_v10 = vcombine.high %v23_v6, %v27_v7  ;;  %v31_v13 = vld [vmem:[%s1528_s0 + $0x80] sm:$0xff]  ;;  %783 = vmatprep.subr.bf16.mxu0 %v960_v3  ;;  %v970_v14 = vcombine.high %v24_v11, %v28_v12  ;;  %v32_v16 = vld [vmem:[%s1528_s0 + $0x88] sm:$0xff]  ;;  %824 = vmatprep.subr.bf16.mxu1 %v962_v8  ;;  %v967_v18 = vcombine.low %v23_v6, %v27_v7 }
   0x6   :  { %v35_v15 = vld [vmem:[%s1528_s0 + $0xa0] sm:$0xff]  ;;  %v36_v17 = vld [vmem:[%s1528_s0 + $0xa8] sm:$0xff]  ;;  %784 = vmatpush1.bf16.msra.mxu0 %v959_v5  ;;  %825 = vmatpush1.bf16.msra.mxu1 %v961_v9  ;;  %v969_v19 = vcombine.low %v24_v11, %v28_v12 }
   0x7   :  { %785 = vmatprep.subr.bf16.mxu0 %v968_v10  ;;  %v976_v20 = vcombine.high %v31_v13, %v35_v15  ;;  %826 = vmatprep.subr.bf16.mxu1 %v970_v14  ;;  %v978_v21 = vcombine.high %v32_v16, %v36_v17  ;;  %v39_v22 = vld [vmem:[%s1528_s0 + $0xc0] sm:$0xff]  ;;  %v40_v24 = vld [vmem:[%s1528_s0 + $0xc8] sm:$0xff]  ;;  %v975_v26 = vcombine.low %v31_v13, %v35_v15 }
   0x8   :  { %v43_v23 = vld [vmem:[%s1528_s0 + $0xe0] sm:$0xff]  ;;  %v44_v25 = vld [vmem:[%s1528_s0 + $0xe8] sm:$0xff]  ;;  %v977_v27 = vcombine.low %v32_v16, %v36_v17 }
   0x9   :  { %v984_v28 = vcombine.high %v39_v22, %v43_v23  ;;  %v986_v29 = vcombine.high %v40_v24, %v44_v25  ;;  %v47_v30 = vld [vmem:[%s1528_s0 + $0x100] sm:$0xff]  ;;  %v48_v32 = vld [vmem:[%s1528_s0 + $0x108] sm:$0xff]  ;;  %v983_v34 = vcombine.low %v39_v22, %v43_v23  ;;  %v985_v35 = vcombine.low %v40_v24, %v44_v25 }
   0xa   :  { %786 = vmatpush1.bf16.msra.mxu0 %v967_v18  ;;  %827 = vmatpush1.bf16.msra.mxu1 %v969_v19  ;;  %v51_v31 = vld [vmem:[%s1528_s0 + $0x120] sm:$0xff]  ;;  %v52_v33 = vld [vmem:[%s1528_s0 + $0x128] sm:$0xff] }
   0xb   :  { %787 = vmatprep.subr.bf16.mxu0 %v976_v20  ;;  %828 = vmatprep.subr.bf16.mxu1 %v978_v21  ;;  %v992_v36 = vcombine.high %v47_v30, %v51_v31  ;;  %v994_v37 = vcombine.high %v48_v32, %v52_v33  ;;  %v55_v38 = vld [vmem:[%s1528_s0 + $0x140] sm:$0xff]  ;;  %v56_v40 = vld [vmem:[%s1528_s0 + $0x148] sm:$0xff]  ;;  %v991_v42 = vcombine.low %v47_v30, %v51_v31 }
   0xc   :  { %v59_v39 = vld [vmem:[%s1528_s0 + $0x160] sm:$0xff]  ;;  %v60_v41 = vld [vmem:[%s1528_s0 + $0x168] sm:$0xff]  ;;  %v993_v43 = vcombine.low %v48_v32, %v52_v33 }
   0xd   :  { %v1000_v44 = vcombine.high %v55_v38, %v59_v39  ;;  %v1002_v45 = vcombine.high %v56_v40, %v60_v41  ;;  %v63_v46 = vld [vmem:[%s1528_s0 + $0x180] sm:$0xff]  ;;  %v64_v48 = vld [vmem:[%s1528_s0 + $0x188] sm:$0xff]  ;;  %v999_v50 = vcombine.low %v55_v38, %v59_v39  ;;  %v1001_v51 = vcombine.low %v56_v40, %v60_v41 }
   0xe   :  { %788 = vmatpush1.bf16.msra.mxu0 %v975_v26  ;;  %829 = vmatpush1.bf16.msra.mxu1 %v977_v27  ;;  %v67_v47 = vld [vmem:[%s1528_s0 + $0x1a0] sm:$0xff]  ;;  %v68_v49 = vld [vmem:[%s1528_s0 + $0x1a8] sm:$0xff] }
   0xf   :  { %789 = vmatprep.subr.bf16.mxu0 %v984_v28  ;;  %830 = vmatprep.subr.bf16.mxu1 %v986_v29  ;;  %v1008_v52 = vcombine.high %v63_v46, %v67_v47  ;;  %v12_v53 = vld [vmem:[%s1529_s1 + $0x8] sm:$0xff]  ;;  %v1010_v54 = vcombine.high %v64_v48, %v68_v49  ;;  %v71_v55 = vld [vmem:[%s1528_s0 + $0x1c0] sm:$0xff]  ;;  %v1007_v60 = vcombine.low %v63_v46, %v67_v47 }
  0x10   :  { %v75_v56 = vld [vmem:[%s1528_s0 + $0x1e0] sm:$0xff]  ;;  %v1195_v57 = vpack.c.bf16 %v12_v53, %v12_v53  ;;  %v72_v58 = vld [vmem:[%s1528_s0 + $0x1c8] sm:$0xff]  ;;  %v1009_v61 = vcombine.low %v64_v48, %v68_v49 }
  0x11   :  { %v76_v59 = vld [vmem:[%s1528_s0 + $0x1e8] sm:$0xff]  ;;  %v1016_v62 = vcombine.high %v71_v55, %v75_v56  ;;  %v79_v0 = vld [vmem:[%s1528_s0 + $0x200] sm:$0xff]  ;;  %v1015_v4 = vcombine.low %v71_v55, %v75_v56 }
  0x12   :  { %790 = vmatpush1.bf16.msra.mxu0 %v983_v34  ;;  %831 = vmatpush1.bf16.msra.mxu1 %v985_v35  ;;  %v1018_v63 = vcombine.high %v72_v58, %v76_v59  ;;  %v83_v1 = vld [vmem:[%s1528_s0 + $0x220] sm:$0xff]  ;;  %v80_v2 = vld [vmem:[%s1528_s0 + $0x208] sm:$0xff]  ;;  %v1017_v5 = vcombine.low %v72_v58, %v76_v59 }
  0x13   :  { %791 = vmatprep.subr.bf16.mxu0 %v992_v36  ;;  %832 = vmatprep.subr.bf16.mxu1 %v994_v37  ;;  %v84_v3 = vld [vmem:[%s1528_s0 + $0x228] sm:$0xff]  ;;  %v1024_v6 = vcombine.high %v79_v0, %v83_v1  ;;  %v87_v8 = vld [vmem:[%s1528_s0 + $0x240] sm:$0xff]  ;;  %v1023_v12 = vcombine.low %v79_v0, %v83_v1  ;;  %v17_v1 = vld [vmem:[%s1528_s0 + $0x10] sm:$0xff] }
  0x14   :  { %815 = vmatprep.mubr.bf16.mxu0 %v1195_v57  ;;  %856 = vmatprep.mubr.bf16.mxu1 %v1195_v57  ;;  %v1026_v7 = vcombine.high %v80_v2, %v84_v3  ;;  %v91_v9 = vld [vmem:[%s1528_s0 + $0x260] sm:$0xff]  ;;  %v88_v10 = vld [vmem:[%s1528_s0 + $0x248] sm:$0xff]  ;;  %v1025_v13 = vcombine.low %v80_v2, %v84_v3  ;;  %v21_v2 = vld [vmem:[%s1528_s0 + $0x30] sm:$0xff] }
  0x15   :  { %v92_v11 = vld [vmem:[%s1528_s0 + $0x268] sm:$0xff]  ;;  %v1032_v14 = vcombine.high %v87_v8, %v91_v9  ;;  %v95_v16 = vld [vmem:[%s1528_s0 + $0x280] sm:$0xff]  ;;  %v1031_v20 = vcombine.low %v87_v8, %v91_v9  ;;  %v18_v3 = vld [vmem:[%s1528_s0 + $0x18] sm:$0xff]  ;;  %v964_v8 = vcombine.high %v17_v1, %v21_v2 }
  0x16   :  { %792 = vmatpush1.bf16.msra.mxu0 %v991_v42  ;;  %833 = vmatpush1.bf16.msra.mxu1 %v993_v43  ;;  %v1034_v15 = vcombine.high %v88_v10, %v92_v11  ;;  %v99_v17 = vld [vmem:[%s1528_s0 + $0x2a0] sm:$0xff]  ;;  %v96_v18 = vld [vmem:[%s1528_s0 + $0x288] sm:$0xff]  ;;  %v1033_v21 = vcombine.low %v88_v10, %v92_v11  ;;  %v25_v10 = vld [vmem:[%s1528_s0 + $0x50] sm:$0xff] }
  0x17   :  { %793 = vmatprep.subr.bf16.mxu0 %v1000_v44  ;;  %834 = vmatprep.subr.bf16.mxu1 %v1002_v45  ;;  %v100_v19 = vld [vmem:[%s1528_s0 + $0x2a8] sm:$0xff]  ;;  %v1040_v22 = vcombine.high %v95_v16, %v99_v17  ;;  %v103_v24 = vld [vmem:[%s1528_s0 + $0x2c0] sm:$0xff]  ;;  %v1039_v28 = vcombine.low %v95_v16, %v99_v17  ;;  %v29_v11 = vld [vmem:[%s1528_s0 + $0x70] sm:$0xff] }
  0x18   :  { %v1042_v23 = vcombine.high %v96_v18, %v100_v19  ;;  %v107_v25 = vld [vmem:[%s1528_s0 + $0x2e0] sm:$0xff]  ;;  %v104_v26 = vld [vmem:[%s1528_s0 + $0x2c8] sm:$0xff]  ;;  %v1041_v29 = vcombine.low %v96_v18, %v100_v19  ;;  %v972_v17 = vcombine.high %v25_v10, %v29_v11  ;;  %v33_v19 = vld [vmem:[%s1528_s0 + $0x90] sm:$0xff] }
  0x19   :  { %v108_v27 = vld [vmem:[%s1528_s0 + $0x2e8] sm:$0xff]  ;;  %v1048_v30 = vcombine.high %v103_v24, %v107_v25  ;;  %v111_v32 = vld [vmem:[%s1528_s0 + $0x300] sm:$0xff]  ;;  %v1047_v36 = vcombine.low %v103_v24, %v107_v25 }
  0x1a   :  { %794 = vmatpush1.bf16.msra.mxu0 %v999_v50  ;;  %835 = vmatpush1.bf16.msra.mxu1 %v1001_v51  ;;  %v1050_v31 = vcombine.high %v104_v26, %v108_v27  ;;  %v115_v33 = vld [vmem:[%s1528_s0 + $0x320] sm:$0xff]  ;;  %v112_v34 = vld [vmem:[%s1528_s0 + $0x308] sm:$0xff]  ;;  %v1049_v37 = vcombine.low %v104_v26, %v108_v27  ;;  %v41_v27 = vld [vmem:[%s1528_s0 + $0xd0] sm:$0xff] }
  0x1b   :  { %795 = vmatprep.subr.bf16.mxu0 %v1008_v52  ;;  %836 = vmatprep.subr.bf16.mxu1 %v1010_v54  ;;  %v116_v35 = vld [vmem:[%s1528_s0 + $0x328] sm:$0xff]  ;;  %v1056_v38 = vcombine.high %v111_v32, %v115_v33  ;;  %v119_v40 = vld [vmem:[%s1528_s0 + $0x340] sm:$0xff]  ;;  %v1055_v44 = vcombine.low %v111_v32, %v115_v33 }
  0x1c   :  { %v1058_v39 = vcombine.high %v112_v34, %v116_v35  ;;  %v123_v41 = vld [vmem:[%s1528_s0 + $0x360] sm:$0xff]  ;;  %v120_v42 = vld [vmem:[%s1528_s0 + $0x348] sm:$0xff]  ;;  %v1057_v45 = vcombine.low %v112_v34, %v116_v35  ;;  %v49_v35 = vld [vmem:[%s1528_s0 + $0x110] sm:$0xff] }
  0x1d   :  { %v124_v43 = vld [vmem:[%s1528_s0 + $0x368] sm:$0xff]  ;;  %v1064_v46 = vcombine.high %v119_v40, %v123_v41  ;;  %v127_v48 = vld [vmem:[%s1528_s0 + $0x380] sm:$0xff]  ;;  %v1063_v52 = vcombine.low %v119_v40, %v123_v41 }
  0x1e   :  { %796 = vmatpush1.bf16.msra.mxu0 %v1007_v60  ;;  %837 = vmatpush1.bf16.msra.mxu1 %v1009_v61  ;;  %v1066_v47 = vcombine.high %v120_v42, %v124_v43  ;;  %v131_v49 = vld [vmem:[%s1528_s0 + $0x3a0] sm:$0xff]  ;;  %v128_v50 = vld [vmem:[%s1528_s0 + $0x388] sm:$0xff]  ;;  %v1065_v53 = vcombine.low %v120_v42, %v124_v43  ;;  %v57_v42 = vld [vmem:[%s1528_s0 + $0x150] sm:$0xff] }
  0x1f   :  { %797 = vmatprep.subr.bf16.mxu0 %v1016_v62  ;;  %838 = vmatprep.subr.bf16.mxu1 %v1018_v63  ;;  %v132_v51 = vld [vmem:[%s1528_s0 + $0x3a8] sm:$0xff]  ;;  %v1072_v54 = vcombine.high %v127_v48, %v131_v49  ;;  %v135_v56 = vld [vmem:[%s1528_s0 + $0x3c0] sm:$0xff]  ;;  %v1071_v61 = vcombine.low %v127_v48, %v131_v49  ;;  %v61_v43 = vld [vmem:[%s1528_s0 + $0x170] sm:$0xff] }
  0x20   :  { %v1074_v55 = vcombine.high %v128_v50, %v132_v51  ;;  %v139_v58 = vld [vmem:[%s1528_s0 + $0x3e0] sm:$0xff]  ;;  %v136_v59 = vld [vmem:[%s1528_s0 + $0x3c8] sm:$0xff]  ;;  %v1073_v62 = vcombine.low %v128_v50, %v132_v51  ;;  %v1004_v48 = vcombine.high %v57_v42, %v61_v43  ;;  %v65_v50 = vld [vmem:[%s1528_s0 + $0x190] sm:$0xff] }
  0x21   :  { %v140_v60 = vld [vmem:[%s1528_s0 + $0x3e8] sm:$0xff]  ;;  %v1080_v63 = vcombine.high %v135_v56, %v139_v58  ;;  %v69_v51 = vld [vmem:[%s1528_s0 + $0x1b0] sm:$0xff] }
  0x22   :  { %798 = vmatpush1.bf16.msra.mxu0 %v1015_v4  ;;  %839 = vmatpush1.bf16.msra.mxu1 %v1017_v5  ;;  %v1082_v0 = vcombine.high %v136_v59, %v140_v60  ;;  %v22_v4 = vld [vmem:[%s1528_s0 + $0x38] sm:$0xff]  ;;  %v1079_v5 = vcombine.low %v135_v56, %v139_v58  ;;  %v1012_v56 = vcombine.high %v65_v50, %v69_v51 }
  0x23   :  { %799 = vmatprep.subr.bf16.mxu0 %v1024_v6  ;;  %840 = vmatprep.subr.bf16.mxu1 %v1026_v7  ;;  %v11_v6 = vld [vmem:[%s1529_s1] sm:$0xff]  ;;  %v1081_v7 = vcombine.low %v136_v59, %v140_v60  ;;  %v966_v9 = vcombine.high %v18_v3, %v22_v4  ;;  %v965_v16 = vcombine.low %v18_v3, %v22_v4  ;;  %v73_v59 = vld [vmem:[%s1528_s0 + $0x1d0] sm:$0xff] }
  0x24   :  { %v77_v60 = vld [vmem:[%s1528_s0 + $0x1f0] sm:$0xff] }
  0x25   :  { %v81_v3 = vld [vmem:[%s1528_s0 + $0x210] sm:$0xff] }
  0x26   :  { %800 = vmatpush1.bf16.msra.mxu0 %v1023_v12  ;;  %841 = vmatpush1.bf16.msra.mxu1 %v1025_v13  ;;  %v1322_v12 = vpack.c.bf16 %v11_v6, %v11_v6  ;;  %v26_v13 = vld [vmem:[%s1528_s0 + $0x58] sm:$0xff]  ;;  %v85_v4 = vld [vmem:[%s1528_s0 + $0x230] sm:$0xff] }
  0x27   :  { %801 = vmatprep.subr.bf16.mxu0 %v1032_v14  ;;  %842 = vmatprep.subr.bf16.mxu1 %v1034_v15  ;;  %v30_v14 = vld [vmem:[%s1528_s0 + $0x78] sm:$0xff]  ;;  %v963_v15 = vcombine.low %v17_v1, %v21_v2  ;;  %v1020_v1 = vcombine.high %v73_v59, %v77_v60 }
  0x28   :  { %v974_v18 = vcombine.high %v26_v13, %v30_v14  ;;  %v973_v24 = vcombine.low %v26_v13, %v30_v14  ;;  %v86_v6 = vld [vmem:[%s1528_s0 + $0x238] sm:$0xff]  ;;  %v93_v13 = vld [vmem:[%s1528_s0 + $0x270] sm:$0xff] }
  0x29   :  { %v90_v14 = vld [vmem:[%s1528_s0 + $0x258] sm:$0xff] }
  0x2a   :  { %802 = vmatpush1.bf16.msra.mxu0 %v1031_v20  ;;  %843 = vmatpush1.bf16.msra.mxu1 %v1033_v21  ;;  %v37_v20 = vld [vmem:[%s1528_s0 + $0xb0] sm:$0xff]  ;;  %v34_v21 = vld [vmem:[%s1528_s0 + $0x98] sm:$0xff] }
  0x2b   :  { %803 = vmatprep.subr.bf16.mxu0 %v1040_v22  ;;  %844 = vmatprep.subr.bf16.mxu1 %v1042_v23  ;;  %v38_v22 = vld [vmem:[%s1528_s0 + $0xb8] sm:$0xff]  ;;  %v971_v23 = vcombine.low %v25_v10, %v29_v11  ;;  %v980_v25 = vcombine.high %v33_v19, %v37_v20  ;;  %v89_v11 = vld [vmem:[%s1528_s0 + $0x250] sm:$0xff] }
  0x2c   :  { %v982_v26 = vcombine.high %v34_v21, %v38_v22  ;;  %v981_v32 = vcombine.low %v34_v21, %v38_v22  ;;  %v101_v21 = vld [vmem:[%s1528_s0 + $0x2b0] sm:$0xff]  ;;  %v98_v22 = vld [vmem:[%s1528_s0 + $0x298] sm:$0xff] }
  0x2e   :  { %804 = vmatpush1.bf16.msra.mxu0 %v1039_v28  ;;  %845 = vmatpush1.bf16.msra.mxu1 %v1041_v29  ;;  %v45_v28 = vld [vmem:[%s1528_s0 + $0xf0] sm:$0xff]  ;;  %v42_v29 = vld [vmem:[%s1528_s0 + $0xd8] sm:$0xff] }
  0x2f   :  { %805 = vmatprep.subr.bf16.mxu0 %v1048_v30  ;;  %846 = vmatprep.subr.bf16.mxu1 %v1050_v31  ;;  %v46_v30 = vld [vmem:[%s1528_s0 + $0xf8] sm:$0xff]  ;;  %v979_v31 = vcombine.low %v33_v19, %v37_v20  ;;  %v988_v33 = vcombine.high %v41_v27, %v45_v28  ;;  %v97_v20 = vld [vmem:[%s1528_s0 + $0x290] sm:$0xff] }
  0x30   :  { %v990_v34 = vcombine.high %v42_v29, %v46_v30 }
  0x32   :  { %806 = vmatpush1.bf16.msra.mxu0 %v1047_v36  ;;  %847 = vmatpush1.bf16.msra.mxu1 %v1049_v37  ;;  %v53_v36 = vld [vmem:[%s1528_s0 + $0x130] sm:$0xff]  ;;  %v54_v37 = vld [vmem:[%s1528_s0 + $0x138] sm:$0xff] }
  0x33   :  { %807 = vmatprep.subr.bf16.mxu0 %v1056_v38  ;;  %848 = vmatprep.subr.bf16.mxu1 %v1058_v39  ;;  %v987_v38 = vcombine.low %v41_v27, %v45_v28  ;;  %v989_v39 = vcombine.low %v42_v29, %v46_v30  ;;  %v996_v40 = vcombine.high %v49_v35, %v53_v36  ;;  %v105_v28 = vld [vmem:[%s1528_s0 + $0x2d0] sm:$0xff]  ;;  %v106_v30 = vld [vmem:[%s1528_s0 + $0x2d8] sm:$0xff] }
  0x34   :  { %v109_v29 = vld [vmem:[%s1528_s0 + $0x2f0] sm:$0xff] }
  0x36   :  { %808 = vmatpush1.bf16.msra.mxu0 %v1055_v44  ;;  %849 = vmatpush1.bf16.msra.mxu1 %v1057_v45  ;;  %v58_v44 = vld [vmem:[%s1528_s0 + $0x158] sm:$0xff] }
  0x37   :  { %809 = vmatprep.subr.bf16.mxu0 %v1064_v46  ;;  %850 = vmatprep.subr.bf16.mxu1 %v1066_v47  ;;  %v62_v45 = vld [vmem:[%s1528_s0 + $0x178] sm:$0xff]  ;;  %v995_v46 = vcombine.low %v49_v35, %v53_v36  ;;  %v113_v36 = vld [vmem:[%s1528_s0 + $0x310] sm:$0xff] }
  0x38   :  { %v1006_v49 = vcombine.high %v58_v44, %v62_v45 }
  0x3a   :  { %810 = vmatpush1.bf16.msra.mxu0 %v1063_v52  ;;  %851 = vmatpush1.bf16.msra.mxu1 %v1065_v53  ;;  %v66_v52 = vld [vmem:[%s1528_s0 + $0x198] sm:$0xff] }
  0x3b   :  { %811 = vmatprep.subr.bf16.mxu0 %v1072_v54  ;;  %852 = vmatprep.subr.bf16.mxu1 %v1074_v55  ;;  %v70_v53 = vld [vmem:[%s1528_s0 + $0x1b8] sm:$0xff]  ;;  %v1003_v54 = vcombine.low %v57_v42, %v61_v43  ;;  %v1005_v55 = vcombine.low %v58_v44, %v62_v45  ;;  %v121_v43 = vld [vmem:[%s1528_s0 + $0x350] sm:$0xff] }
  0x3c   :  { %v1014_v58 = vcombine.high %v66_v52, %v70_v53  ;;  %v125_v44 = vld [vmem:[%s1528_s0 + $0x370] sm:$0xff]  ;;  %v122_v45 = vld [vmem:[%s1528_s0 + $0x358] sm:$0xff] }
  0x3e   :  { %812 = vmatpush1.bf16.msra.mxu0 %v1071_v61  ;;  %853 = vmatpush1.bf16.msra.mxu1 %v1073_v62  ;;  %v74_v61 = vld [vmem:[%s1528_s0 + $0x1d8] sm:$0xff] }
  0x3f   :  { %813 = vmatprep.subr.bf16.mxu0 %v1080_v63  ;;  %854 = vmatprep.subr.bf16.mxu1 %v1082_v0  ;;  %v78_v62 = vld [vmem:[%s1528_s0 + $0x1f8] sm:$0xff]  ;;  %v1011_v63 = vcombine.low %v65_v50, %v69_v51  ;;  %v1013_v0 = vcombine.low %v66_v52, %v70_v53  ;;  %v129_v51 = vld [vmem:[%s1528_s0 + $0x390] sm:$0xff] }
  0x40   :  { %v1022_v2 = vcombine.high %v74_v61, %v78_v62  ;;  %v133_v52 = vld [vmem:[%s1528_s0 + $0x3b0] sm:$0xff]  ;;  %v130_v53 = vld [vmem:[%s1528_s0 + $0x398] sm:$0xff] }
  0x42   :  { %814 = vmatpush1.bf16.msra.mxu0 %v1079_v5  ;;  %855 = vmatpush1.bf16.msra.mxu1 %v1081_v7  ;;  %v82_v5 = vld [vmem:[%s1528_s0 + $0x218] sm:$0xff]  ;;  %v1019_v7 = vcombine.low %v73_v59, %v77_v60  ;;  %v137_v60 = vld [vmem:[%s1528_s0 + $0x3d0] sm:$0xff] }
  0x43   :  { %865 = vmatprep.subr.bf16.mxu0 %v964_v8  ;;  %906 = vmatprep.subr.bf16.mxu1 %v966_v9  ;;  %v1021_v8 = vcombine.low %v74_v61, %v78_v62  ;;  %v1028_v9 = vcombine.high %v81_v3, %v85_v4  ;;  %v1030_v10 = vcombine.high %v82_v5, %v86_v6  ;;  %v141_v61 = vld [vmem:[%s1528_s0 + $0x3f0] sm:$0xff]  ;;  %v138_v62 = vld [vmem:[%s1528_s0 + $0x3d8] sm:$0xff] }
  0x45   :  { %816 = vmatmul.mubr.bf16.vlgmr.msra.gmra.mrb[0].mxu0 %v1322_v12  ;;  %857 = vmatmul.mubr.bf16.vlgmr.msra.gmra.mrb[0].mxu1 %v1322_v12 }
  0x46   :  { %866 = vmatpush1.bf16.msra.mxu0 %v963_v15  ;;  %907 = vmatpush1.bf16.msra.mxu1 %v965_v16  ;;  %v94_v15 = vld [vmem:[%s1528_s0 + $0x278] sm:$0xff]  ;;  %v1027_v16 = vcombine.low %v81_v3, %v85_v4  ;;  %v1083_v4 = vcombine.low %v137_v60, %v141_v61 }
  0x47   :  { %867 = vmatprep.subr.bf16.mxu0 %v972_v17  ;;  %908 = vmatprep.subr.bf16.mxu1 %v974_v18  ;;  %v1029_v17 = vcombine.low %v82_v5, %v86_v6  ;;  %v1036_v18 = vcombine.high %v89_v11, %v93_v13  ;;  %v1038_v19 = vcombine.high %v90_v14, %v94_v15 }
  0x48   :  { %897 = vmatprep.mubr.bf16.mxu0 %v1195_v57  ;;  %938 = vmatprep.mubr.bf16.mxu1 %v1195_v57  ;;  %v50_v57 = vld [vmem:[%s1528_s0 + $0x118] sm:$0xff] }
  0x49   :  { %v998_v41 = vcombine.high %v50_v57, %v54_v37  ;;  %v997_v47 = vcombine.low %v50_v57, %v54_v37  ;;  %v117_v57 = vld [vmem:[%s1528_s0 + $0x330] sm:$0xff]  ;;  %v114_v37 = vld [vmem:[%s1528_s0 + $0x318] sm:$0xff] }
  0x4a   :  { %868 = vmatpush1.bf16.msra.mxu0 %v971_v23  ;;  %909 = vmatpush1.bf16.msra.mxu1 %v973_v24  ;;  %v102_v23 = vld [vmem:[%s1528_s0 + $0x2b8] sm:$0xff]  ;;  %v1035_v24 = vcombine.low %v89_v11, %v93_v13 }
  0x4b   :  { %869 = vmatprep.subr.bf16.mxu0 %v980_v25  ;;  %910 = vmatprep.subr.bf16.mxu1 %v982_v26  ;;  %v1037_v25 = vcombine.low %v90_v14, %v94_v15  ;;  %v1044_v26 = vcombine.high %v97_v20, %v101_v21  ;;  %v1046_v27 = vcombine.high %v98_v22, %v102_v23 }
  0x4e   :  { %870 = vmatpush1.bf16.msra.mxu0 %v979_v31  ;;  %911 = vmatpush1.bf16.msra.mxu1 %v981_v32  ;;  %v110_v31 = vld [vmem:[%s1528_s0 + $0x2f8] sm:$0xff]  ;;  %v1043_v32 = vcombine.low %v97_v20, %v101_v21 }
  0x4f   :  { %871 = vmatprep.subr.bf16.mxu0 %v988_v33  ;;  %912 = vmatprep.subr.bf16.mxu1 %v990_v34  ;;  %v1045_v33 = vcombine.low %v98_v22, %v102_v23  ;;  %v1052_v34 = vcombine.high %v105_v28, %v109_v29  ;;  %v1054_v35 = vcombine.high %v106_v30, %v110_v31 }
  0x52   :  { %872 = vmatpush1.bf16.msra.mxu0 %v987_v38  ;;  %913 = vmatpush1.bf16.msra.mxu1 %v989_v39  ;;  %v118_v38 = vld [vmem:[%s1528_s0 + $0x338] sm:$0xff]  ;;  %v1051_v39 = vcombine.low %v105_v28, %v109_v29 }
  0x53   :  { %873 = vmatprep.subr.bf16.mxu0 %v996_v40  ;;  %914 = vmatprep.subr.bf16.mxu1 %v998_v41  ;;  %v1053_v40 = vcombine.low %v106_v30, %v110_v31  ;;  %v1060_v41 = vcombine.high %v113_v36, %v117_v57  ;;  %v1062_v42 = vcombine.high %v114_v37, %v118_v38 }
  0x56   :  { %874 = vmatpush1.bf16.msra.mxu0 %v995_v46  ;;  %915 = vmatpush1.bf16.msra.mxu1 %v997_v47  ;;  %v126_v46 = vld [vmem:[%s1528_s0 + $0x378] sm:$0xff]  ;;  %v1059_v47 = vcombine.low %v113_v36, %v117_v57 }
  0x57   :  { %875 = vmatprep.subr.bf16.mxu0 %v1004_v48  ;;  %916 = vmatprep.subr.bf16.mxu1 %v1006_v49  ;;  %v1061_v48 = vcombine.low %v114_v37, %v118_v38  ;;  %v1068_v49 = vcombine.high %v121_v43, %v125_v44  ;;  %v1070_v50 = vcombine.high %v122_v45, %v126_v46 }
  0x5a   :  { %876 = vmatpush1.bf16.msra.mxu0 %v1003_v54  ;;  %917 = vmatpush1.bf16.msra.mxu1 %v1005_v55  ;;  %v134_v54 = vld [vmem:[%s1528_s0 + $0x3b8] sm:$0xff]  ;;  %v1067_v55 = vcombine.low %v121_v43, %v125_v44 }
  0x5b   :  { %877 = vmatprep.subr.bf16.mxu0 %v1012_v56  ;;  %918 = vmatprep.subr.bf16.mxu1 %v1014_v58  ;;  %v1069_v56 = vcombine.low %v122_v45, %v126_v46  ;;  %v1076_v58 = vcombine.high %v129_v51, %v133_v52  ;;  %v1078_v59 = vcombine.high %v130_v53, %v134_v54 }
  0x5e   :  { %878 = vmatpush1.bf16.msra.mxu0 %v1011_v63  ;;  %919 = vmatpush1.bf16.msra.mxu1 %v1013_v0  ;;  %v142_v63 = vld [vmem:[%s1528_s0 + $0x3f8] sm:$0xff]  ;;  %v1075_v0 = vcombine.low %v129_v51, %v133_v52 }
  0x5f   :  { %879 = vmatprep.subr.bf16.mxu0 %v1020_v1  ;;  %920 = vmatprep.subr.bf16.mxu1 %v1022_v2  ;;  %v1077_v1 = vcombine.low %v130_v53, %v134_v54  ;;  %v1084_v2 = vcombine.high %v137_v60, %v141_v61  ;;  %v1086_v3 = vcombine.high %v138_v62, %v142_v63 }
  0x60   :  { %v1085_v5 = vcombine.low %v138_v62, %v142_v63 }
  0x62   :  { %880 = vmatpush1.bf16.msra.mxu0 %v1019_v7  ;;  %921 = vmatpush1.bf16.msra.mxu1 %v1021_v8 }
  0x63   :  { %881 = vmatprep.subr.bf16.mxu0 %v1028_v9  ;;  %922 = vmatprep.subr.bf16.mxu1 %v1030_v10 }
  0x66   :  { %882 = vmatpush1.bf16.msra.mxu0 %v1027_v16  ;;  %923 = vmatpush1.bf16.msra.mxu1 %v1029_v17 }
  0x67   :  { %883 = vmatprep.subr.bf16.mxu0 %v1036_v18  ;;  %924 = vmatprep.subr.bf16.mxu1 %v1038_v19 }
  0x6a   :  { %884 = vmatpush1.bf16.msra.mxu0 %v1035_v24  ;;  %925 = vmatpush1.bf16.msra.mxu1 %v1037_v25 }
  0x6b   :  { %885 = vmatprep.subr.bf16.mxu0 %v1044_v26  ;;  %926 = vmatprep.subr.bf16.mxu1 %v1046_v27 }
  0x6e   :  { %886 = vmatpush1.bf16.msra.mxu0 %v1043_v32  ;;  %927 = vmatpush1.bf16.msra.mxu1 %v1045_v33 }
  0x6f   :  { %887 = vmatprep.subr.bf16.mxu0 %v1052_v34  ;;  %928 = vmatprep.subr.bf16.mxu1 %v1054_v35 }
  0x72   :  { %888 = vmatpush1.bf16.msra.mxu0 %v1051_v39  ;;  %929 = vmatpush1.bf16.msra.mxu1 %v1053_v40 }
  0x73   :  { %889 = vmatprep.subr.bf16.mxu0 %v1060_v41  ;;  %930 = vmatprep.subr.bf16.mxu1 %v1062_v42 }
  0x76   :  { %890 = vmatpush1.bf16.msra.mxu0 %v1059_v47  ;;  %931 = vmatpush1.bf16.msra.mxu1 %v1061_v48 }
  0x77   :  { %891 = vmatprep.subr.bf16.mxu0 %v1068_v49  ;;  %932 = vmatprep.subr.bf16.mxu1 %v1070_v50 }
  0x7a   :  { %892 = vmatpush1.bf16.msra.mxu0 %v1067_v55  ;;  %933 = vmatpush1.bf16.msra.mxu1 %v1069_v56 }
  0x7b   :  { %893 = vmatprep.subr.bf16.mxu0 %v1076_v58  ;;  %934 = vmatprep.subr.bf16.mxu1 %v1078_v59 }
  0x7e   :  { %894 = vmatpush1.bf16.msra.mxu0 %v1075_v0  ;;  %935 = vmatpush1.bf16.msra.mxu1 %v1077_v1 }
  0x7f   :  { %895 = vmatprep.subr.bf16.mxu0 %v1084_v2  ;;  %936 = vmatprep.subr.bf16.mxu1 %v1086_v3 }
  0x82   :  { %896 = vmatpush1.bf16.msra.mxu0 %v1083_v4  ;;  %937 = vmatpush1.bf16.msra.mxu1 %v1085_v5 }
  0x85   :  { %898 = vmatmul.mubr.bf16.vlgmr.msra.gmra.mrb[4].mxu0 %v1322_v12  ;;  %939 = vmatmul.mubr.bf16.vlgmr.msra.gmra.mrb[4].mxu1 %v1322_v12 }
 0x118   :  { %v817_v6 = vpop.f32.mrb[0].mxu0  ;;  %v858_v7 = vpop.f32.mrb[0].mxu1 }
 0x119   :  { %947 = vst [vmem:[%s1530_s2] sm:$0xff] %v817_v6  ;;  %v819_v8 = vpop.f32.mrb[1].mxu0  ;;  %949 = vst [vmem:[%s1530_s2 + $0x10] sm:$0xff] %v858_v7  ;;  %v860_v9 = vpop.f32.mrb[1].mxu1 }
 0x11a   :  { %948 = vst [vmem:[%s1530_s2 + $0x8] sm:$0xff] %v819_v8  ;;  %v821_v10 = vpop.f32.mrb[2].mxu0  ;;  %950 = vst [vmem:[%s1530_s2 + $0x18] sm:$0xff] %v860_v9  ;;  %v862_v12 = vpop.f32.mrb[2].mxu1 }
 0x11b   :  { %v822_v11 = vpop.f32.mrb[3].mxu0  ;;  %v863_v13 = vpop.f32.mrb[3].mxu1 }
 0x158   :  { %v899_v14 = vpop.f32.mrb[4].mxu0  ;;  %v940_v15 = vpop.f32.mrb[4].mxu1 }
 0x159   :  { %951 = vst [vmem:[%s1530_s2 + $0x20] sm:$0xff] %v899_v14  ;;  %v901_v16 = vpop.f32.mrb[5].mxu0  ;;  %953 = vst [vmem:[%s1530_s2 + $0x30] sm:$0xff] %v940_v15  ;;  %v942_v17 = vpop.f32.mrb[5].mxu1 }
 0x15a   :  { %952 = vst [vmem:[%s1530_s2 + $0x28] sm:$0xff] %v901_v16  ;;  %v903_v18 = vpop.f32.mrb[6].mxu0  ;;  %954 = vst [vmem:[%s1530_s2 + $0x38] sm:$0xff] %v942_v17  ;;  %v944_v19 = vpop.f32.mrb[6].mxu1 }
 0x15b   :  { %v904_v20 = vpop.f32.mrb[7].mxu0  ;;  %v945_v21 = vpop.f32.mrb[7].mxu1 }

</bundles_post_ra>
